<compile_context>
chip_gen: v7x
topology: tpu7x:2x2x1
jax: 0.10.0
libtpu: 0.0.40
codegen_flags: <defaults>
</compile_context>

<pallas_src>
import time

import numpy as np
import jax
import jax.numpy as jnp
from jax import lax
from jax.experimental import pallas as pl
from jax.experimental.pallas import tpu as pltpu


# ----------------------------- Pallas kernel --------------------------------
def _make_rtf_ista_kernel(num_iter: int):
    def kernel(thr_ref, c_ref, mt_ref, d_ref, x_ref):
        # thr_ref: (1, 1) f32 in SMEM (scalar threshold)
        # c_ref:   (B, k)  f32  VMEM   c = y @ (D @ W).T   (per-call, precomputed)
        # mt_ref:  (n, k)  bf16 VMEM   MT = (D @ S).T      (weight-only, cacheable)
        # d_ref:   (k, n)  bf16 VMEM   dictionary D
        # x_ref:   (num_iter+1, B, n) f32 VMEM output (all iterates)
        bsz = c_ref.shape[0]
        n = mt_ref.shape[0]
        thr = thr_ref[0, 0]

        c = c_ref[...]            # (B, k) f32
        MT = mt_ref[...]          # (n, k) bf16
        Dm = d_ref[...]           # (k, n) bf16

        # x[0] = 0
        x_ref[0] = jnp.zeros((bsz, n), jnp.float32)
        if num_iter == 0:
            return

        # ---- iteration 0: d == 0  =>  u_pre = c  (skip the d @ M.T matmul)
        u = c - jnp.clip(c, -thr, thr)                       # soft_thr, 2 VPU ops
        d = jnp.dot(u.astype(jnp.bfloat16), Dm,
                    preferred_element_type=jnp.float32)      # (B, n) f32
        x_ref[1] = d

        # ---- remaining iterations: 2 bf16 MXU matmuls + soft-threshold each
        for i in range(1, num_iter):
            u_pre = jnp.dot(d.astype(jnp.bfloat16), MT,
                            preferred_element_type=jnp.float32) + c   # (B, k)
            u = u_pre - jnp.clip(u_pre, -thr, thr)
            d = jnp.dot(u.astype(jnp.bfloat16), Dm,
                        preferred_element_type=jnp.float32)           # (B, n)
            x_ref[i + 1] = d

    return kernel


def rtf_ista_forward(y, S, W, D, thr, num_iter):
    """Runs numIter RTF-ISTA iterations; returns (list_of_iterates, time_list)."""
    bsz, _ = y.shape
    n = S.shape[0]

    hi = lax.Precision.HIGHEST
    # Weight-only fused products (depend only on S, W, D). In repeated
    # inference these two lines can be cached/hoisted outside the call.
    M = jnp.dot(D, S, precision=hi)                     # (k, n)
    DW = jnp.dot(D, W, precision=hi)                    # (k, m)
    MT_bf16 = jnp.transpose(M).astype(jnp.bfloat16)     # (n, k), pre-transposed once
    D_bf16 = D.astype(jnp.bfloat16)                     # (k, n)

    # Per-call, loop-invariant bias term c = y @ (D @ W).T, kept fp32.
    c = jnp.dot(y, jnp.transpose(DW), precision=hi).astype(jnp.float32)  # (B, k)

    thr_arr = jnp.asarray(thr, jnp.float32).reshape(1, 1)

    x_all = pl.pallas_call(
        _make_rtf_ista_kernel(num_iter),
        out_shape=jax.ShapeDtypeStruct((num_iter + 1, bsz, n), jnp.float32),
        in_specs=[
            pl.BlockSpec(memory_space=pltpu.MemorySpace.SMEM),   # thr scalar
            pl.BlockSpec(memory_space=pltpu.MemorySpace.VMEM),   # c
            pl.BlockSpec(memory_space=pltpu.MemorySpace.VMEM),   # MT (bf16)
            pl.BlockSpec(memory_space=pltpu.MemorySpace.VMEM),   # D  (bf16)
        ],
        out_specs=pl.BlockSpec(memory_space=pltpu.MemorySpace.VMEM),
    )(thr_arr, c, MT_bf16, D_bf16)

    # TODO(synk): per-iteration wall-clock timestamps (time_list) cannot be
    # taken inside a fused TPU kernel; only total wall time is reported here.
    start = time.time()
    x_all = jax.block_until_ready(x_all)
    elapsed = time.time() - start
    time_list = [elapsed] * num_iter

    x_list = [x_all[i] for i in range(num_iter + 1)]
    return x_list, time_list


# -------------------- deterministic parameter construction ------------------
def build_params(m, n, k, thr_t, key):
    """Replicates a_RTF_ISTA_model.weights_init() deterministically."""
    k_a, k_d = jax.random.split(key)
    A = np.asarray(jax.random.normal(k_a, (m, n)), dtype=np.float64)
    D2 = np.asarray(jax.random.normal(k_d, (k, n)), dtype=np.float64) / np.sqrt(n)

    Ainv = np.linalg.pinv(A)
    AinvA = Ainv @ A
    d_AinvA = np.linalg.inv(np.diag(np.diag(AinvA)))
    Ainv = d_AinvA @ Ainv
    alpha = np.linalg.norm(Ainv @ A, 2) * 1.001

    S = np.eye(A.shape[1]) - (1.0 / alpha) * (Ainv @ A)     # (n, n)
    B = (1.0 / alpha) * Ainv                                # (n, m)  == W
    thr = thr_t / alpha

    return (jnp.asarray(S, jnp.float32),
            jnp.asarray(B, jnp.float32),
            jnp.asarray(D2, jnp.float32),
            jnp.float32(thr))


# ------------------------------ reference -----------------------------------
def _ref_forward(y, S, W, D, thr, num_iter):
    """Pure-numpy fp64 reference with the ORIGINAL (unfused) op ordering."""
    y = np.asarray(y, np.float64)
    S = np.asarray(S, np.float64)
    W = np.asarray(W, np.float64)
    D = np.asarray(D, np.float64)
    thr = float(thr)
    d = np.zeros((y.shape[0], S.shape[0]), np.float64)
    xs = [d]
    for _ in range(num_iter):
        z = d @ S.T + y @ W.T
        u = z @ D.T
        u = np.maximum(u - thr, 0.0) - np.maximum(-u - thr, 0.0)
        d = u @ D
        xs.append(d)
    return xs


# -------------------------------- main ---------------------------------------
if __name__ == "__main__":
    m, n, k = 32, 128, 128      # y in R^m, code x in R^n, dictionary D: (k, n)
    batch = 8
    num_iter = 6
    thr_t = 0.1

    key = jax.random.PRNGKey(0)
    key_y, key_p = jax.random.split(key)

    S, W, D, thr = build_params(m, n, k, thr_t, key_p)
    y = jax.random.normal(key_y, (batch, m), dtype=jnp.float32)

    x_list, time_list = rtf_ista_forward(y, S, W, D, thr, num_iter)
    jax.block_until_ready(x_list[-1])

    # Correctness check against a pure-numpy reference.  bf16 MXU operands
    # (fp32 accumulate) + algebraic fusion reorder accumulation, so use a
    # normalized max-error criterion instead of tight elementwise rtol.
    ref = _ref_forward(y, S, W, D, thr, num_iter)
    for step, (got, want) in enumerate(zip(x_list, ref)):
        got = np.asarray(got, np.float64)
        want = np.asarray(want, np.float64)
        scale = max(float(np.max(np.abs(want))), 1e-6)
        err = float(np.max(np.abs(got - want))) / scale
        assert err < 3e-2, f"iterate {step}: normalized error {err:.3e} too large"

    print("KERNEL_OK")
</pallas_src>

<mosaic_0001>
module attributes {stable_mosaic.version = 11 : i64} {
  func.func @kernel(%arg0: memref<1x1xf32, #tpu.memory_space<smem>>, %arg1: memref<8x128xf32, #tpu.memory_space<vmem>>, %arg2: memref<128x128xbf16, #tpu.memory_space<vmem>>, %arg3: memref<128x128xbf16, #tpu.memory_space<vmem>>, %arg4: memref<7x8x128xf32, #tpu.memory_space<vmem>>) attributes {dimension_semantics = [], scalar_prefetch = 0 : i64, scratch_operands = 0 : i64, tpu.core_type = #tpu.core_type<tc>} {
    %c0 = arith.constant 0 : index
    %c0_0 = arith.constant 0 : index
    %0 = memref.load %arg0[%c0, %c0_0] : memref<1x1xf32, #tpu.memory_space<smem>>
    %c0_1 = arith.constant 0 : index
    %c0_2 = arith.constant 0 : index
    %1 = vector.load %arg1[%c0_1, %c0_2] : memref<8x128xf32, #tpu.memory_space<vmem>>, vector<8x128xf32>
    %c0_3 = arith.constant 0 : index
    %c0_4 = arith.constant 0 : index
    %2 = vector.load %arg2[%c0_3, %c0_4] : memref<128x128xbf16, #tpu.memory_space<vmem>>, vector<128x128xbf16>
    %c0_5 = arith.constant 0 : index
    %c0_6 = arith.constant 0 : index
    %3 = vector.load %arg3[%c0_5, %c0_6] : memref<128x128xbf16, #tpu.memory_space<vmem>>, vector<128x128xbf16>
    %cst = arith.constant 0.000000e+00 : f32
    %4 = vector.broadcast %cst : f32 to vector<8x128xf32>
    %c0_7 = arith.constant 0 : index
    %c0_8 = arith.constant 0 : index
    %c0_9 = arith.constant 0 : index
    %5 = vector.load %arg4[%c0_7, %c0_8, %c0_9] : memref<7x8x128xf32, #tpu.memory_space<vmem>>, vector<1x8x128xf32>
    %6 = vector.shape_cast %5 : vector<1x8x128xf32> to vector<8x128xf32>
    %7 = vector.shape_cast %4 : vector<8x128xf32> to vector<1x8x128xf32>
    tpu.vector_store %arg4[%c0_7, %c0_8, %c0_9], %7 {strides = array<i32>} : memref<7x8x128xf32, #tpu.memory_space<vmem>>, vector<1x8x128xf32>,
    %cst_10 = arith.constant 0.000000e+00 : f32
    %8 = arith.subf %cst_10, %0 : f32
    %9 = vector.broadcast %8 : f32 to vector<8x128xf32>
    %10 = arith.maximumf %9, %1 : vector<8x128xf32>
    %11 = vector.broadcast %0 : f32 to vector<8x128xf32>
    %12 = arith.minimumf %11, %10 : vector<8x128xf32>
    %13 = arith.subf %1, %12 : vector<8x128xf32>
    %14 = arith.truncf %13 : vector<8x128xf32> to vector<8x128xbf16>
    %cst_11 = arith.constant dense<0.000000e+00> : vector<8x128xf32>
    %15 = tpu.matmul %14, %3, %cst_11 {dimension_numbers = #tpu.dot_dimension_numbers<[1], [0], [0], [1], [0, 0, 1, 1], [], []>} : vector<8x128xbf16>, vector<128x128xbf16>, vector<8x128xf32> -> vector<8x128xf32>
    %c1 = arith.constant 1 : index
    %c0_12 = arith.constant 0 : index
    %c0_13 = arith.constant 0 : index
    %16 = vector.load %arg4[%c1, %c0_12, %c0_13] : memref<7x8x128xf32, #tpu.memory_space<vmem>>, vector<1x8x128xf32>
    %17 = vector.shape_cast %16 : vector<1x8x128xf32> to vector<8x128xf32>
    %18 = vector.shape_cast %15 : vector<8x128xf32> to vector<1x8x128xf32>
    tpu.vector_store %arg4[%c1, %c0_12, %c0_13], %18 {strides = array<i32>} : memref<7x8x128xf32, #tpu.memory_space<vmem>>, vector<1x8x128xf32>,
    %19 = arith.truncf %15 : vector<8x128xf32> to vector<8x128xbf16>
    %cst_14 = arith.constant dense<0.000000e+00> : vector<8x128xf32>
    %20 = tpu.matmul %19, %2, %cst_14 {dimension_numbers = #tpu.dot_dimension_numbers<[1], [0], [0], [1], [0, 0, 1, 1], [], []>} : vector<8x128xbf16>, vector<128x128xbf16>, vector<8x128xf32> -> vector<8x128xf32>
    %21 = arith.addf %20, %1 : vector<8x128xf32>
    %cst_15 = arith.constant 0.000000e+00 : f32
    %22 = arith.subf %cst_15, %0 : f32
    %23 = vector.broadcast %22 : f32 to vector<8x128xf32>
    %24 = arith.maximumf %23, %21 : vector<8x128xf32>
    %25 = vector.broadcast %0 : f32 to vector<8x128xf32>
    %26 = arith.minimumf %25, %24 : vector<8x128xf32>
    %27 = arith.subf %21, %26 : vector<8x128xf32>
    %28 = arith.truncf %27 : vector<8x128xf32> to vector<8x128xbf16>
    %cst_16 = arith.constant dense<0.000000e+00> : vector<8x128xf32>
    %29 = tpu.matmul %28, %3, %cst_16 {dimension_numbers = #tpu.dot_dimension_numbers<[1], [0], [0], [1], [0, 0, 1, 1], [], []>} : vector<8x128xbf16>, vector<128x128xbf16>, vector<8x128xf32> -> vector<8x128xf32>
    %c2 = arith.constant 2 : index
    %c0_17 = arith.constant 0 : index
    %c0_18 = arith.constant 0 : index
    %30 = vector.load %arg4[%c2, %c0_17, %c0_18] : memref<7x8x128xf32, #tpu.memory_space<vmem>>, vector<1x8x128xf32>
    %31 = vector.shape_cast %30 : vector<1x8x128xf32> to vector<8x128xf32>
    %32 = vector.shape_cast %29 : vector<8x128xf32> to vector<1x8x128xf32>
    tpu.vector_store %arg4[%c2, %c0_17, %c0_18], %32 {strides = array<i32>} : memref<7x8x128xf32, #tpu.memory_space<vmem>>, vector<1x8x128xf32>,
    %33 = arith.truncf %29 : vector<8x128xf32> to vector<8x128xbf16>
    %cst_19 = arith.constant dense<0.000000e+00> : vector<8x128xf32>
    %34 = tpu.matmul %33, %2, %cst_19 {dimension_numbers = #tpu.dot_dimension_numbers<[1], [0], [0], [1], [0, 0, 1, 1], [], []>} : vector<8x128xbf16>, vector<128x128xbf16>, vector<8x128xf32> -> vector<8x128xf32>
    %35 = arith.addf %34, %1 : vector<8x128xf32>
    %cst_20 = arith.constant 0.000000e+00 : f32
    %36 = arith.subf %cst_20, %0 : f32
    %37 = vector.broadcast %36 : f32 to vector<8x128xf32>
    %38 = arith.maximumf %37, %35 : vector<8x128xf32>
    %39 = vector.broadcast %0 : f32 to vector<8x128xf32>
    %40 = arith.minimumf %39, %38 : vector<8x128xf32>
    %41 = arith.subf %35, %40 : vector<8x128xf32>
    %42 = arith.truncf %41 : vector<8x128xf32> to vector<8x128xbf16>
    %cst_21 = arith.constant dense<0.000000e+00> : vector<8x128xf32>
    %43 = tpu.matmul %42, %3, %cst_21 {dimension_numbers = #tpu.dot_dimension_numbers<[1], [0], [0], [1], [0, 0, 1, 1], [], []>} : vector<8x128xbf16>, vector<128x128xbf16>, vector<8x128xf32> -> vector<8x128xf32>
    %c3 = arith.constant 3 : index
    %c0_22 = arith.constant 0 : index
    %c0_23 = arith.constant 0 : index
    %44 = vector.load %arg4[%c3, %c0_22, %c0_23] : memref<7x8x128xf32, #tpu.memory_space<vmem>>, vector<1x8x128xf32>
    %45 = vector.shape_cast %44 : vector<1x8x128xf32> to vector<8x128xf32>
    %46 = vector.shape_cast %43 : vector<8x128xf32> to vector<1x8x128xf32>
    tpu.vector_store %arg4[%c3, %c0_22, %c0_23], %46 {strides = array<i32>} : memref<7x8x128xf32, #tpu.memory_space<vmem>>, vector<1x8x128xf32>,
    %47 = arith.truncf %43 : vector<8x128xf32> to vector<8x128xbf16>
    %cst_24 = arith.constant dense<0.000000e+00> : vector<8x128xf32>
    %48 = tpu.matmul %47, %2, %cst_24 {dimension_numbers = #tpu.dot_dimension_numbers<[1], [0], [0], [1], [0, 0, 1, 1], [], []>} : vector<8x128xbf16>, vector<128x128xbf16>, vector<8x128xf32> -> vector<8x128xf32>
    %49 = arith.addf %48, %1 : vector<8x128xf32>
    %cst_25 = arith.constant 0.000000e+00 : f32
    %50 = arith.subf %cst_25, %0 : f32
    %51 = vector.broadcast %50 : f32 to vector<8x128xf32>
    %52 = arith.maximumf %51, %49 : vector<8x128xf32>
    %53 = vector.broadcast %0 : f32 to vector<8x128xf32>
    %54 = arith.minimumf %53, %52 : vector<8x128xf32>
    %55 = arith.subf %49, %54 : vector<8x128xf32>
    %56 = arith.truncf %55 : vector<8x128xf32> to vector<8x128xbf16>
    %cst_26 = arith.constant dense<0.000000e+00> : vector<8x128xf32>
    %57 = tpu.matmul %56, %3, %cst_26 {dimension_numbers = #tpu.dot_dimension_numbers<[1], [0], [0], [1], [0, 0, 1, 1], [], []>} : vector<8x128xbf16>, vector<128x128xbf16>, vector<8x128xf32> -> vector<8x128xf32>
    %c4 = arith.constant 4 : index
    %c0_27 = arith.constant 0 : index
    %c0_28 = arith.constant 0 : index
    %58 = vector.load %arg4[%c4, %c0_27, %c0_28] : memref<7x8x128xf32, #tpu.memory_space<vmem>>, vector<1x8x128xf32>
    %59 = vector.shape_cast %58 : vector<1x8x128xf32> to vector<8x128xf32>
    %60 = vector.shape_cast %57 : vector<8x128xf32> to vector<1x8x128xf32>
    tpu.vector_store %arg4[%c4, %c0_27, %c0_28], %60 {strides = array<i32>} : memref<7x8x128xf32, #tpu.memory_space<vmem>>, vector<1x8x128xf32>,
    %61 = arith.truncf %57 : vector<8x128xf32> to vector<8x128xbf16>
    %cst_29 = arith.constant dense<0.000000e+00> : vector<8x128xf32>
    %62 = tpu.matmul %61, %2, %cst_29 {dimension_numbers = #tpu.dot_dimension_numbers<[1], [0], [0], [1], [0, 0, 1, 1], [], []>} : vector<8x128xbf16>, vector<128x128xbf16>, vector<8x128xf32> -> vector<8x128xf32>
    %63 = arith.addf %62, %1 : vector<8x128xf32>
    %cst_30 = arith.constant 0.000000e+00 : f32
    %64 = arith.subf %cst_30, %0 : f32
    %65 = vector.broadcast %64 : f32 to vector<8x128xf32>
    %66 = arith.maximumf %65, %63 : vector<8x128xf32>
    %67 = vector.broadcast %0 : f32 to vector<8x128xf32>
    %68 = arith.minimumf %67, %66 : vector<8x128xf32>
    %69 = arith.subf %63, %68 : vector<8x128xf32>
    %70 = arith.truncf %69 : vector<8x128xf32> to vector<8x128xbf16>
    %cst_31 = arith.constant dense<0.000000e+00> : vector<8x128xf32>
    %71 = tpu.matmul %70, %3, %cst_31 {dimension_numbers = #tpu.dot_dimension_numbers<[1], [0], [0], [1], [0, 0, 1, 1], [], []>} : vector<8x128xbf16>, vector<128x128xbf16>, vector<8x128xf32> -> vector<8x128xf32>
    %c5 = arith.constant 5 : index
    %c0_32 = arith.constant 0 : index
    %c0_33 = arith.constant 0 : index
    %72 = vector.load %arg4[%c5, %c0_32, %c0_33] : memref<7x8x128xf32, #tpu.memory_space<vmem>>, vector<1x8x128xf32>
    %73 = vector.shape_cast %72 : vector<1x8x128xf32> to vector<8x128xf32>
    %74 = vector.shape_cast %71 : vector<8x128xf32> to vector<1x8x128xf32>
    tpu.vector_store %arg4[%c5, %c0_32, %c0_33], %74 {strides = array<i32>} : memref<7x8x128xf32, #tpu.memory_space<vmem>>, vector<1x8x128xf32>,
    %75 = arith.truncf %71 : vector<8x128xf32> to vector<8x128xbf16>
    %cst_34 = arith.constant dense<0.000000e+00> : vector<8x128xf32>
    %76 = tpu.matmul %75, %2, %cst_34 {dimension_numbers = #tpu.dot_dimension_numbers<[1], [0], [0], [1], [0, 0, 1, 1], [], []>} : vector<8x128xbf16>, vector<128x128xbf16>, vector<8x128xf32> -> vector<8x128xf32>
    %77 = arith.addf %76, %1 : vector<8x128xf32>
    %cst_35 = arith.constant 0.000000e+00 : f32
    %78 = arith.subf %cst_35, %0 : f32
    %79 = vector.broadcast %78 : f32 to vector<8x128xf32>
    %80 = arith.maximumf %79, %77 : vector<8x128xf32>
    %81 = vector.broadcast %0 : f32 to vector<8x128xf32>
    %82 = arith.minimumf %81, %80 : vector<8x128xf32>
    %83 = arith.subf %77, %82 : vector<8x128xf32>
    %84 = arith.truncf %83 : vector<8x128xf32> to vector<8x128xbf16>
    %cst_36 = arith.constant dense<0.000000e+00> : vector<8x128xf32>
    %85 = tpu.matmul %84, %3, %cst_36 {dimension_numbers = #tpu.dot_dimension_numbers<[1], [0], [0], [1], [0, 0, 1, 1], [], []>} : vector<8x128xbf16>, vector<128x128xbf16>, vector<8x128xf32> -> vector<8x128xf32>
    %c6 = arith.constant 6 : index
    %c0_37 = arith.constant 0 : index
    %c0_38 = arith.constant 0 : index
    %86 = vector.load %arg4[%c6, %c0_37, %c0_38] : memref<7x8x128xf32, #tpu.memory_space<vmem>>, vector<1x8x128xf32>
    %87 = vector.shape_cast %86 : vector<1x8x128xf32> to vector<8x128xf32>
    %88 = vector.shape_cast %85 : vector<8x128xf32> to vector<1x8x128xf32>
    tpu.vector_store %arg4[%c6, %c0_37, %c0_38], %88 {strides = array<i32>} : memref<7x8x128xf32, #tpu.memory_space<vmem>>, vector<1x8x128xf32>,
    return
  }
}

</mosaic_0001>

<bundles_post_ra>
// kernel: tpu_custom_call.1
= control target key start
LH: loop header
LB: loop body
LE: loop exit
PB: predicated region body
PF: predicated region fallthrough
CT: control target
= control target key end

     0   :  { %10 = vsyncpa [#allocation4], 0  ;;  %s1498_s0 = inlined_call_operand.<no memory space> [shape: f32[1,1], index: 0, kind: input, shape index: {}]   ;;  %s1499_s1 = inlined_call_operand.hbm [shape: f32[8,128], index: 1, kind: input, shape index: {}]   ;;  %s1500_s2 = inlined_call_operand.hbm [shape: bf16[128,128], index: 2, kind: input, shape index: {}]   ;;  %s1501_s3 = inlined_call_operand.hbm [shape: bf16[128,128], index: 3, kind: input, shape index: {}]   ;;  %s1502_s4 = inlined_call_operand.hbm [shape: f32[7,8,128], index: 4, kind: output, shape index: {}]  }
   0x1   :  { %11 = vsyncpa [#allocation7], 0 }
   0x2   :  { %12 = vsyncpa [#allocation5], 0  ;;  %s1147_s15 = smov [#allocation6]   ;;  %s1053_s19 = scalar_lea.hbm %s1500_s2, 1024 }
   0x3   :  { %s30_s16 = sshll.u32 %s1147_s15, 4  ;;  %p1054_p0 = scmp.ne.s32.totalorder %s1500_s2, %s1053_s19  ;;  %s31_s16 = int_to_ptr.vmem [resolvable:$true] %s30_s16 }
   0x4   :  { %p1057_p1 = scmp.lt.u32.totalorder %s1053_s19, %s1500_s2 }
   0x6   :  { %p1059_p2 = pnand %p1057_p1, %p1054_p0 }
   0x8   :  { %1062 = shalt.err (!%p1059_p2)
}
   0x9   :  { %s1063_s24 = scalar_lea.vmem %s31_s16, 1024  ;;  %p1068_p4 = scmp.lt.s32.totalorder %s31_s16, %s31_s16 }
   0xa   :  { %p1064_p3 = scmp.ne.s32.totalorder %s31_s16, %s1063_s24  ;;  %p1069_p5 = scmp.lt.s32.totalorder %s1063_s24, %s1063_s24 }
   0xc   :  { %p1070_p6 = por %p1069_p5, %p1068_p4 }
   0xe   :  { %p1071_p7 = pnand %p1070_p6, %p1064_p3 }
  0x10   :  { %1074 = shalt.err (!%p1071_p7)
}
  0x11   :  { %s1148_s25 = smov 64   ;;  %s1149_s26 = smov 4  }
  0x12   :  { %36 = dma.hbm_to_vmem [thread:$0]  %s1500_s2, 1024, %s31_s16, [#allocation7], %s1148_s25, %s1148_s25, %s1149_s26  }
  0x13   :  { %s1150_s29 = smov [#allocation3]   ;;  %s1151_s5 = smov [#allocation8]  }
  0x14   :  { %s21_s30 = sshll.u32 %s1150_s29, 4  ;;  %s42_s6 = sshll.u32 %s1151_s5, 4  ;;  %s22_s30 = int_to_ptr.vmem [resolvable:$true] %s21_s30  ;;  %s43_s6 = int_to_ptr.vmem [resolvable:$true] %s42_s6 }
  0x15   :  { %s1075_s9 = scalar_lea.hbm %s1499_s1, 128 }
  0x16   :  { %p1076_p8 = scmp.ne.s32.totalorder %s1499_s1, %s1075_s9  ;;  %p1079_p9 = scmp.lt.u32.totalorder %s1075_s9, %s1499_s1 }
  0x18   :  { %p1081_p10 = pnand %p1079_p9, %p1076_p8 }
  0x1a   :  { %1084 = shalt.err (!%p1081_p10)
}
  0x1b   :  { %s1085_s2 = scalar_lea.vmem %s22_s30, 128  ;;  %p1090_p12 = scmp.lt.s32.totalorder %s22_s30, %s22_s30 }
  0x1c   :  { %p1086_p11 = scmp.ne.s32.totalorder %s22_s30, %s1085_s2  ;;  %p1091_p13 = scmp.lt.s32.totalorder %s1085_s2, %s1085_s2 }
  0x1e   :  { %p1092_p0 = por %p1091_p13, %p1090_p12 }
  0x20   :  { %p1093_p1 = pnand %p1092_p0, %p1086_p11 }
  0x22   :  { %1096 = shalt.err (!%p1093_p1)
}
  0x23   :  { %24 = dma.hbm_to_vmem [thread:$0]  %s1499_s1, 128, %s22_s30, [#allocation4]  }
  0x24   :  { %s1097_s18 = scalar_lea.hbm %s1501_s3, 1024 }
  0x25   :  { %p1098_p2 = scmp.ne.s32.totalorder %s1501_s3, %s1097_s18  ;;  %p1101_p3 = scmp.lt.u32.totalorder %s1097_s18, %s1501_s3 }
  0x27   :  { %p1103_p4 = pnand %p1101_p3, %p1098_p2 }
  0x29   :  { %1106 = shalt.err (!%p1103_p4)
}
  0x2a   :  { %s1107_s23 = scalar_lea.vmem %s43_s6, 1024  ;;  %p1112_p6 = scmp.lt.s32.totalorder %s43_s6, %s43_s6 }
  0x2b   :  { %p1108_p5 = scmp.ne.s32.totalorder %s43_s6, %s1107_s23  ;;  %p1113_p7 = scmp.lt.s32.totalorder %s1107_s23, %s1107_s23 }
  0x2d   :  { %p1114_p8 = por %p1113_p7, %p1112_p6 }
  0x2f   :  { %p1115_p9 = pnand %p1114_p8, %p1108_p5 }
  0x31   :  { %1118 = shalt.err (!%p1115_p9)
}
  0x32   :  { %48 = dma.hbm_to_vmem [thread:$0]  %s1501_s3, 1024, %s43_s6, [#allocation7], %s1148_s25, %s1148_s25, %s1149_s26  }
  0x33   :  { %1141 = dma.done.wait [#allocation4], 128  }
  0x34   :  { %1142 = vsyncadd [#allocation4], 4294967168 }
  0x35   :  { %1143 = dma.done.wait [#allocation7], 2048  }
  0x36   :  { %1144 = vsyncadd [#allocation7], 4294965248  ;;  %v1152_v0 = vmov 0.0   ;;  %vm1153_vm0 = vmmov 0   ;;  %v1231_v1 = vld [vmem:[#allocation8] sm:$0xff]   ;;  %v1234_v2 = vld [vmem:[#allocation8 + $0x8] sm:$0xff]   ;;  %v1274_v13 = vstv %s1498_s0 }
  0x37   :  { %807 = vmatprep.subr.bf16.mxu0 %v1152_v0  ;;  %93 = vst [vmem:[#allocation9] sm:$0xff] %v1152_v0  ;;  %823 = vmatprep.mubr.msk.bf16.mxu0 %vm1153_vm0, %v1152_v0  ;;  %v1238_v3 = vld [vmem:[#allocation8 + $0x10] sm:$0xff]   ;;  %v1241_v4 = vld [vmem:[#allocation6] sm:$0xff]   ;;  %v1244_v5 = vld [vmem:[#allocation8 + $0x18] sm:$0xff]   ;;  %s94_s26 = ssub.f32 0.0, %s1498_s0  ;;  %s1154_s0 = smov [#allocation9]  }
  0x38   :  { %827 = vmatprep.subr.bf16.mxu1 %v1152_v0  ;;  %843 = vmatprep.mubr.msk.bf16.mxu1 %vm1153_vm0, %v1152_v0  ;;  %v1251_v6 = vld [vmem:[#allocation6 + $0x8] sm:$0xff]   ;;  %v1254_v7 = vld [vmem:[#allocation8 + $0x20] sm:$0xff]   ;;  %v1257_v8 = vld [vmem:[#allocation3] sm:$0xff]  ;;  %s679_s29 = sshll.u32 %s1154_s0, 4  ;;  %s680_s29 = int_to_ptr.vmem [resolvable:$true] %s679_s29 }
  0x39   :  { %808 = vmatpush3.bf16.msra.mxu0 %v1231_v1  ;;  %828 = vmatpush3.bf16.msra.mxu1 %v1241_v4  ;;  %v1259_v9 = vstv %s94_s26  ;;  %v1263_v10 = vld [vmem:[#allocation6 + $0x10] sm:$0xff]   ;;  %v1269_v12 = vld [vmem:[#allocation8 + $0x28] sm:$0xff]   ;;  %v1278_v14 = vld [vmem:[#allocation6 + $0x18] sm:$0xff]   ;;  %s1119_s30 = scalar_lea.vmem %s680_s29, 896  ;;  %p1124_p11 = scmp.lt.s32.totalorder %s680_s29, %s680_s29 }
  0x3a   :  { %809 = vmatprep.subr.bf16.mxu0 %v1152_v0  ;;  %829 = vmatprep.subr.bf16.mxu1 %v1152_v0  ;;  %v96_v11 = vmax.f32 %v1259_v9, %v1257_v8  ;;  %v1283_v16 = vld [vmem:[#allocation8 + $0x30] sm:$0xff]   ;;  %v1287_v17 = vld [vmem:[#allocation6 + $0x20] sm:$0xff]   ;;  %v1292_v19 = vld [vmem:[#allocation8 + $0x38] sm:$0xff]   ;;  %p1120_p10 = scmp.ne.s32.totalorder %s680_s29, %s1119_s30  ;;  %p1125_p12 = scmp.lt.s32.totalorder %s1119_s30, %s1119_s30 }
  0x3b   :  { %v1296_v20 = vld [vmem:[#allocation6 + $0x28] sm:$0xff]   ;;  %v1301_v22 = vld [vmem:[#allocation6 + $0x30] sm:$0xff]   ;;  %v1325_v23 = vld [vmem:[#allocation6 + $0x38] sm:$0xff]  }
  0x3c   :  { %v98_v15 = vmin.f32 %v1274_v13, %v96_v11  ;;  %p1126_p13 = por %p1125_p12, %p1124_p11 }
  0x3d   :  { %810 = vmatpush3.bf16.msra.mxu0 %v1234_v2  ;;  %830 = vmatpush3.bf16.msra.mxu1 %v1251_v6 }
  0x3e   :  { %811 = vmatprep.subr.bf16.mxu0 %v1152_v0  ;;  %831 = vmatprep.subr.bf16.mxu1 %v1152_v0  ;;  %v99_v18 = vsub.f32 %v1257_v8, %v98_v15  ;;  %p1127_p0 = pnand %p1126_p13, %p1120_p10 }
  0x40   :  { %v100_v21 = vpack.c.bf16 %v99_v18, %v99_v18 }
  0x41   :  { %812 = vmatpush3.bf16.msra.mxu0 %v1238_v3  ;;  %832 = vmatpush3.bf16.msra.mxu1 %v1263_v10 }
  0x42   :  { %813 = vmatprep.subr.bf16.mxu0 %v1152_v0  ;;  %833 = vmatprep.subr.bf16.mxu1 %v1152_v0 }
  0x45   :  { %814 = vmatpush3.bf16.msra.mxu0 %v1244_v5  ;;  %834 = vmatpush3.bf16.msra.mxu1 %v1278_v14 }
  0x46   :  { %815 = vmatprep.subr.bf16.mxu0 %v1152_v0  ;;  %835 = vmatprep.subr.bf16.mxu1 %v1152_v0 }
  0x49   :  { %816 = vmatpush3.bf16.msra.mxu0 %v1254_v7  ;;  %836 = vmatpush3.bf16.msra.mxu1 %v1287_v17 }
  0x4a   :  { %817 = vmatprep.subr.bf16.mxu0 %v1152_v0  ;;  %837 = vmatprep.subr.bf16.mxu1 %v1152_v0 }
  0x4d   :  { %818 = vmatpush3.bf16.msra.mxu0 %v1269_v12  ;;  %838 = vmatpush3.bf16.msra.mxu1 %v1296_v20 }
  0x4e   :  { %819 = vmatprep.subr.bf16.mxu0 %v1152_v0  ;;  %839 = vmatprep.subr.bf16.mxu1 %v1152_v0 }
  0x51   :  { %820 = vmatpush3.bf16.msra.mxu0 %v1283_v16  ;;  %840 = vmatpush3.bf16.msra.mxu1 %v1301_v22 }
  0x52   :  { %821 = vmatprep.subr.bf16.mxu0 %v1152_v0  ;;  %841 = vmatprep.subr.bf16.mxu1 %v1152_v0 }
  0x55   :  { %822 = vmatpush3.bf16.msra.mxu0 %v1292_v19  ;;  %842 = vmatpush3.bf16.msra.mxu1 %v1325_v23 }
  0x56   :  { %847 = vmatprep.subr.bf16.mxu0 %v1152_v0  ;;  %867 = vmatprep.subr.bf16.mxu1 %v1152_v0 }
  0x58   :  { %824 = vmatmul.mubr.bf16.vlgmr.msra.gmra.mrb[0].mxu0 %v100_v21 }
  0x59   :  { %848 = vmatpush3.bf16.msra.mxu0 %v1231_v1  ;;  %863 = vmatprep.mubr.msk.bf16.mxu0 %vm1153_vm0, %v1152_v0 }
  0x5a   :  { %849 = vmatprep.subr.bf16.mxu0 %v1152_v0 }
  0x5d   :  { %850 = vmatpush3.bf16.msra.mxu0 %v1234_v2 }
  0x5e   :  { %851 = vmatprep.subr.bf16.mxu0 %v1152_v0 }
  0x61   :  { %852 = vmatpush3.bf16.msra.mxu0 %v1238_v3 }
  0x62   :  { %853 = vmatprep.subr.bf16.mxu0 %v1152_v0 }
  0x65   :  { %854 = vmatpush3.bf16.msra.mxu0 %v1244_v5 }
  0x66   :  { %855 = vmatprep.subr.bf16.mxu0 %v1152_v0 }
  0x69   :  { %856 = vmatpush3.bf16.msra.mxu0 %v1254_v7 }
  0x6a   :  { %857 = vmatprep.subr.bf16.mxu0 %v1152_v0 }
  0x6d   :  { %858 = vmatpush3.bf16.msra.mxu0 %v1269_v12 }
  0x6e   :  { %859 = vmatprep.subr.bf16.mxu0 %v1152_v0 }
  0x71   :  { %860 = vmatpush3.bf16.msra.mxu0 %v1283_v16 }
  0x72   :  { %861 = vmatprep.subr.bf16.mxu0 %v1152_v0 }
  0x75   :  { %862 = vmatpush3.bf16.msra.mxu0 %v1292_v19 }
  0x76   :  { %887 = vmatprep.subr.bf16.mxu0 %v1152_v0 }
 0x12b   :  { %v183_v24 = vpop.f32.mrb[0].mxu0 }
 0x12c   :  { %190 = vst [vmem:[#allocation9 + $0x8] sm:$0xff] %v183_v24  ;;  %v191_v25 = vpack.c.bf16 %v183_v24, %v183_v24  ;;  %v825_v26 = vpop.f32.mrb[1].mxu0 }
 0x12d   :  { %v186_v27 = vpop.f32.mrb[2].mxu0 }
 0x12e   :  { %v826_v28 = vpop.f32.mrb[3].mxu0  ;;  %844 = vmatmul.mubr.bf16.vlgmr.msra.gmra.mrb[0].mxu1 %v191_v25 }
 0x12f   :  { %868 = vmatpush3.bf16.msra.mxu1 %v1241_v4  ;;  %883 = vmatprep.mubr.msk.bf16.mxu1 %vm1153_vm0, %v1152_v0 }
 0x130   :  { %869 = vmatprep.subr.bf16.mxu1 %v1152_v0 }
 0x133   :  { %870 = vmatpush3.bf16.msra.mxu1 %v1251_v6 }
 0x134   :  { %871 = vmatprep.subr.bf16.mxu1 %v1152_v0 }
 0x137   :  { %872 = vmatpush3.bf16.msra.mxu1 %v1263_v10 }
 0x138   :  { %873 = vmatprep.subr.bf16.mxu1 %v1152_v0 }
 0x13b   :  { %874 = vmatpush3.bf16.msra.mxu1 %v1278_v14 }
 0x13c   :  { %875 = vmatprep.subr.bf16.mxu1 %v1152_v0 }
 0x13f   :  { %876 = vmatpush3.bf16.msra.mxu1 %v1287_v17 }
 0x140   :  { %877 = vmatprep.subr.bf16.mxu1 %v1152_v0 }
 0x143   :  { %878 = vmatpush3.bf16.msra.mxu1 %v1296_v20 }
 0x144   :  { %879 = vmatprep.subr.bf16.mxu1 %v1152_v0 }
 0x147   :  { %880 = vmatpush3.bf16.msra.mxu1 %v1301_v22 }
 0x148   :  { %881 = vmatprep.subr.bf16.mxu1 %v1152_v0 }
 0x14b   :  { %882 = vmatpush3.bf16.msra.mxu1 %v1325_v23 }
 0x14c   :  { %907 = vmatprep.subr.bf16.mxu1 %v1152_v0 }
 0x201   :  { %v274_v29 = vpop.f32.mrb[0].mxu1 }
 0x202   :  { %v275_v30 = vadd.f32 %v274_v29, %v1257_v8  ;;  %v845_v31 = vpop.f32.mrb[1].mxu1 }
 0x203   :  { %v277_v32 = vpop.f32.mrb[2].mxu1 }
 0x204   :  { %v280_v33 = vmax.f32 %v1259_v9, %v275_v30  ;;  %v846_v34 = vpop.f32.mrb[3].mxu1 }
 0x206   :  { %v281_v35 = vmin.f32 %v1274_v13, %v280_v33 }
 0x208   :  { %v282_v36 = vsub.f32 %v275_v30, %v281_v35 }
 0x20a   :  { %v283_v37 = vpack.c.bf16 %v282_v36, %v282_v36 }
 0x20c   :  { %864 = vmatmul.mubr.bf16.vlgmr.msra.gmra.mrb[4].mxu0 %v283_v37 }
 0x20d   :  { %888 = vmatpush3.bf16.msra.mxu0 %v1231_v1  ;;  %903 = vmatprep.mubr.msk.bf16.mxu0 %vm1153_vm0, %v1152_v0 }
 0x20e   :  { %889 = vmatprep.subr.bf16.mxu0 %v1152_v0 }
 0x211   :  { %890 = vmatpush3.bf16.msra.mxu0 %v1234_v2 }
 0x212   :  { %891 = vmatprep.subr.bf16.mxu0 %v1152_v0 }
 0x215   :  { %892 = vmatpush3.bf16.msra.mxu0 %v1238_v3 }
 0x216   :  { %893 = vmatprep.subr.bf16.mxu0 %v1152_v0 }
 0x219   :  { %894 = vmatpush3.bf16.msra.mxu0 %v1244_v5 }
 0x21a   :  { %895 = vmatprep.subr.bf16.mxu0 %v1152_v0 }
 0x21d   :  { %896 = vmatpush3.bf16.msra.mxu0 %v1254_v7 }
 0x21e   :  { %897 = vmatprep.subr.bf16.mxu0 %v1152_v0 }
 0x221   :  { %898 = vmatpush3.bf16.msra.mxu0 %v1269_v12 }
 0x222   :  { %899 = vmatprep.subr.bf16.mxu0 %v1152_v0 }
 0x225   :  { %900 = vmatpush3.bf16.msra.mxu0 %v1283_v16 }
 0x226   :  { %901 = vmatprep.subr.bf16.mxu0 %v1152_v0 }
 0x229   :  { %902 = vmatpush3.bf16.msra.mxu0 %v1292_v19 }
 0x22a   :  { %927 = vmatprep.subr.bf16.mxu0 %v1152_v0 }
 0x2df   :  { %v318_v38 = vpop.f32.mrb[4].mxu0 }
 0x2e0   :  { %325 = vst [vmem:[#allocation9 + $0x10] sm:$0xff] %v318_v38  ;;  %v326_v39 = vpack.c.bf16 %v318_v38, %v318_v38  ;;  %v865_v40 = vpop.f32.mrb[5].mxu0 }
 0x2e1   :  { %v321_v41 = vpop.f32.mrb[6].mxu0 }
 0x2e2   :  { %v866_v42 = vpop.f32.mrb[7].mxu0  ;;  %884 = vmatmul.mubr.bf16.vlgmr.msra.gmra.mrb[4].mxu1 %v326_v39 }
 0x2e3   :  { %908 = vmatpush3.bf16.msra.mxu1 %v1241_v4  ;;  %923 = vmatprep.mubr.msk.bf16.mxu1 %vm1153_vm0, %v1152_v0 }
 0x2e4   :  { %909 = vmatprep.subr.bf16.mxu1 %v1152_v0 }
 0x2e7   :  { %910 = vmatpush3.bf16.msra.mxu1 %v1251_v6 }
 0x2e8   :  { %911 = vmatprep.subr.bf16.mxu1 %v1152_v0 }
 0x2eb   :  { %912 = vmatpush3.bf16.msra.mxu1 %v1263_v10 }
 0x2ec   :  { %913 = vmatprep.subr.bf16.mxu1 %v1152_v0 }
 0x2ef   :  { %914 = vmatpush3.bf16.msra.mxu1 %v1278_v14 }
 0x2f0   :  { %915 = vmatprep.subr.bf16.mxu1 %v1152_v0 }
 0x2f3   :  { %916 = vmatpush3.bf16.msra.mxu1 %v1287_v17 }
 0x2f4   :  { %917 = vmatprep.subr.bf16.mxu1 %v1152_v0 }
 0x2f7   :  { %918 = vmatpush3.bf16.msra.mxu1 %v1296_v20 }
 0x2f8   :  { %919 = vmatprep.subr.bf16.mxu1 %v1152_v0 }
 0x2fb   :  { %920 = vmatpush3.bf16.msra.mxu1 %v1301_v22 }
 0x2fc   :  { %921 = vmatprep.subr.bf16.mxu1 %v1152_v0 }
 0x2ff   :  { %922 = vmatpush3.bf16.msra.mxu1 %v1325_v23 }
 0x300   :  { %947 = vmatprep.subr.bf16.mxu1 %v1152_v0 }
 0x3b5   :  { %v361_v43 = vpop.f32.mrb[4].mxu1 }
 0x3b6   :  { %v362_v44 = vadd.f32 %v361_v43, %v1257_v8  ;;  %v885_v45 = vpop.f32.mrb[5].mxu1 }
 0x3b7   :  { %v364_v46 = vpop.f32.mrb[6].mxu1 }
 0x3b8   :  { %v367_v47 = vmax.f32 %v1259_v9, %v362_v44  ;;  %v886_v48 = vpop.f32.mrb[7].mxu1 }
 0x3ba   :  { %v368_v49 = vmin.f32 %v1274_v13, %v367_v47 }
 0x3bc   :  { %v369_v50 = vsub.f32 %v362_v44, %v368_v49 }
 0x3be   :  { %v370_v51 = vpack.c.bf16 %v369_v50, %v369_v50 }
 0x3c0   :  { %904 = vmatmul.mubr.bf16.vlgmr.msra.gmra.mrb[8].mxu0 %v370_v51 }
 0x3c1   :  { %928 = vmatpush3.bf16.msra.mxu0 %v1231_v1  ;;  %943 = vmatprep.mubr.msk.bf16.mxu0 %vm1153_vm0, %v1152_v0 }
 0x3c2   :  { %929 = vmatprep.subr.bf16.mxu0 %v1152_v0 }
 0x3c5   :  { %930 = vmatpush3.bf16.msra.mxu0 %v1234_v2 }
 0x3c6   :  { %931 = vmatprep.subr.bf16.mxu0 %v1152_v0 }
 0x3c9   :  { %932 = vmatpush3.bf16.msra.mxu0 %v1238_v3 }
 0x3ca   :  { %933 = vmatprep.subr.bf16.mxu0 %v1152_v0 }
 0x3cd   :  { %934 = vmatpush3.bf16.msra.mxu0 %v1244_v5 }
 0x3ce   :  { %935 = vmatprep.subr.bf16.mxu0 %v1152_v0 }
 0x3d1   :  { %936 = vmatpush3.bf16.msra.mxu0 %v1254_v7 }
 0x3d2   :  { %937 = vmatprep.subr.bf16.mxu0 %v1152_v0 }
 0x3d5   :  { %938 = vmatpush3.bf16.msra.mxu0 %v1269_v12 }
 0x3d6   :  { %939 = vmatprep.subr.bf16.mxu0 %v1152_v0 }
 0x3d9   :  { %940 = vmatpush3.bf16.msra.mxu0 %v1283_v16 }
 0x3da   :  { %941 = vmatprep.subr.bf16.mxu0 %v1152_v0 }
 0x3dd   :  { %942 = vmatpush3.bf16.msra.mxu0 %v1292_v19 }
 0x3de   :  { %967 = vmatprep.subr.bf16.mxu0 %v1152_v0 }
 0x493   :  { %v405_v52 = vpop.f32.mrb[8].mxu0 }
 0x494   :  { %412 = vst [vmem:[#allocation9 + $0x18] sm:$0xff] %v405_v52  ;;  %v413_v53 = vpack.c.bf16 %v405_v52, %v405_v52  ;;  %v905_v54 = vpop.f32.mrb[9].mxu0 }
 0x495   :  { %v408_v55 = vpop.f32.mrb[10].mxu0 }
 0x496   :  { %v906_v56 = vpop.f32.mrb[11].mxu0  ;;  %924 = vmatmul.mubr.bf16.vlgmr.msra.gmra.mrb[8].mxu1 %v413_v53 }
 0x497   :  { %948 = vmatpush3.bf16.msra.mxu1 %v1241_v4  ;;  %963 = vmatprep.mubr.msk.bf16.mxu1 %vm1153_vm0, %v1152_v0 }
 0x498   :  { %949 = vmatprep.subr.bf16.mxu1 %v1152_v0 }
 0x49b   :  { %950 = vmatpush3.bf16.msra.mxu1 %v1251_v6 }
 0x49c   :  { %951 = vmatprep.subr.bf16.mxu1 %v1152_v0 }
 0x49f   :  { %952 = vmatpush3.bf16.msra.mxu1 %v1263_v10 }
 0x4a0   :  { %953 = vmatprep.subr.bf16.mxu1 %v1152_v0 }
 0x4a3   :  { %954 = vmatpush3.bf16.msra.mxu1 %v1278_v14 }
 0x4a4   :  { %955 = vmatprep.subr.bf16.mxu1 %v1152_v0 }
 0x4a7   :  { %956 = vmatpush3.bf16.msra.mxu1 %v1287_v17 }
 0x4a8   :  { %957 = vmatprep.subr.bf16.mxu1 %v1152_v0 }
 0x4ab   :  { %958 = vmatpush3.bf16.msra.mxu1 %v1296_v20 }
 0x4ac   :  { %959 = vmatprep.subr.bf16.mxu1 %v1152_v0 }
 0x4af   :  { %960 = vmatpush3.bf16.msra.mxu1 %v1301_v22 }
 0x4b0   :  { %961 = vmatprep.subr.bf16.mxu1 %v1152_v0 }
 0x4b3   :  { %962 = vmatpush3.bf16.msra.mxu1 %v1325_v23 }
 0x4b4   :  { %987 = vmatprep.subr.bf16.mxu1 %v1152_v0 }
 0x569   :  { %v448_v57 = vpop.f32.mrb[8].mxu1 }
 0x56a   :  { %v449_v58 = vadd.f32 %v448_v57, %v1257_v8  ;;  %v925_v59 = vpop.f32.mrb[9].mxu1 }
 0x56b   :  { %v451_v60 = vpop.f32.mrb[10].mxu1 }
 0x56c   :  { %v454_v61 = vmax.f32 %v1259_v9, %v449_v58  ;;  %v926_v62 = vpop.f32.mrb[11].mxu1 }
 0x56e   :  { %v455_v63 = vmin.f32 %v1274_v13, %v454_v61 }
 0x570   :  { %v456_v11 = vsub.f32 %v449_v58, %v455_v63 }
 0x572   :  { %v457_v15 = vpack.c.bf16 %v456_v11, %v456_v11 }
 0x574   :  { %944 = vmatmul.mubr.bf16.vlgmr.msra.gmra.mrb[12].mxu0 %v457_v15 }
 0x575   :  { %968 = vmatpush3.bf16.msra.mxu0 %v1231_v1  ;;  %983 = vmatprep.mubr.msk.bf16.mxu0 %vm1153_vm0, %v1152_v0 }
 0x576   :  { %969 = vmatprep.subr.bf16.mxu0 %v1152_v0 }
 0x579   :  { %970 = vmatpush3.bf16.msra.mxu0 %v1234_v2 }
 0x57a   :  { %971 = vmatprep.subr.bf16.mxu0 %v1152_v0 }
 0x57d   :  { %972 = vmatpush3.bf16.msra.mxu0 %v1238_v3 }
 0x57e   :  { %973 = vmatprep.subr.bf16.mxu0 %v1152_v0 }
 0x581   :  { %974 = vmatpush3.bf16.msra.mxu0 %v1244_v5 }
 0x582   :  { %975 = vmatprep.subr.bf16.mxu0 %v1152_v0 }
 0x585   :  { %976 = vmatpush3.bf16.msra.mxu0 %v1254_v7 }
 0x586   :  { %977 = vmatprep.subr.bf16.mxu0 %v1152_v0 }
 0x589   :  { %978 = vmatpush3.bf16.msra.mxu0 %v1269_v12 }
 0x58a   :  { %979 = vmatprep.subr.bf16.mxu0 %v1152_v0 }
 0x58d   :  { %980 = vmatpush3.bf16.msra.mxu0 %v1283_v16 }
 0x58e   :  { %981 = vmatprep.subr.bf16.mxu0 %v1152_v0 }
 0x591   :  { %982 = vmatpush3.bf16.msra.mxu0 %v1292_v19 }
 0x592   :  { %1007 = vmatprep.subr.bf16.mxu0 %v1152_v0 }
 0x647   :  { %v492_v18 = vpop.f32.mrb[12].mxu0 }
 0x648   :  { %499 = vst [vmem:[#allocation9 + $0x20] sm:$0xff] %v492_v18  ;;  %v500_v21 = vpack.c.bf16 %v492_v18, %v492_v18  ;;  %v945_v24 = vpop.f32.mrb[13].mxu0 }
 0x649   :  { %v495_v25 = vpop.f32.mrb[14].mxu0 }
 0x64a   :  { %v946_v26 = vpop.f32.mrb[15].mxu0  ;;  %964 = vmatmul.mubr.bf16.vlgmr.msra.gmra.mrb[12].mxu1 %v500_v21 }
 0x64b   :  { %988 = vmatpush3.bf16.msra.mxu1 %v1241_v4  ;;  %1003 = vmatprep.mubr.msk.bf16.mxu1 %vm1153_vm0, %v1152_v0 }
 0x64c   :  { %989 = vmatprep.subr.bf16.mxu1 %v1152_v0 }
 0x64f   :  { %990 = vmatpush3.bf16.msra.mxu1 %v1251_v6 }
 0x650   :  { %991 = vmatprep.subr.bf16.mxu1 %v1152_v0 }
 0x653   :  { %992 = vmatpush3.bf16.msra.mxu1 %v1263_v10 }
 0x654   :  { %993 = vmatprep.subr.bf16.mxu1 %v1152_v0 }
 0x657   :  { %994 = vmatpush3.bf16.msra.mxu1 %v1278_v14 }
 0x658   :  { %995 = vmatprep.subr.bf16.mxu1 %v1152_v0 }
 0x65b   :  { %996 = vmatpush3.bf16.msra.mxu1 %v1287_v17 }
 0x65c   :  { %997 = vmatprep.subr.bf16.mxu1 %v1152_v0 }
 0x65f   :  { %998 = vmatpush3.bf16.msra.mxu1 %v1296_v20 }
 0x660   :  { %999 = vmatprep.subr.bf16.mxu1 %v1152_v0 }
 0x663   :  { %1000 = vmatpush3.bf16.msra.mxu1 %v1301_v22 }
 0x664   :  { %1001 = vmatprep.subr.bf16.mxu1 %v1152_v0 }
 0x667   :  { %1002 = vmatpush3.bf16.msra.mxu1 %v1325_v23 }
 0x71d   :  { %v535_v4 = vpop.f32.mrb[12].mxu1 }
 0x71e   :  { %v536_v6 = vadd.f32 %v535_v4, %v1257_v8  ;;  %v965_v10 = vpop.f32.mrb[13].mxu1 }
 0x71f   :  { %v538_v14 = vpop.f32.mrb[14].mxu1 }
 0x720   :  { %v541_v27 = vmax.f32 %v1259_v9, %v536_v6  ;;  %v966_v17 = vpop.f32.mrb[15].mxu1 }
 0x722   :  { %v542_v28 = vmin.f32 %v1274_v13, %v541_v27 }
 0x724   :  { %v543_v29 = vsub.f32 %v536_v6, %v542_v28 }
 0x726   :  { %v544_v20 = vpack.c.bf16 %v543_v29, %v543_v29 }
 0x728   :  { %984 = vmatmul.mubr.bf16.vlgmr.msra.gmra.mrb[16].mxu0 %v544_v20 }
 0x729   :  { %1008 = vmatpush3.bf16.msra.mxu0 %v1231_v1  ;;  %1023 = vmatprep.mubr.msk.bf16.mxu0 %vm1153_vm0, %v1152_v0 }
 0x72a   :  { %1009 = vmatprep.subr.bf16.mxu0 %v1152_v0 }
 0x72d   :  { %1010 = vmatpush3.bf16.msra.mxu0 %v1234_v2 }
 0x72e   :  { %1011 = vmatprep.subr.bf16.mxu0 %v1152_v0 }
 0x731   :  { %1012 = vmatpush3.bf16.msra.mxu0 %v1238_v3 }
 0x732   :  { %1013 = vmatprep.subr.bf16.mxu0 %v1152_v0 }
 0x735   :  { %1014 = vmatpush3.bf16.msra.mxu0 %v1244_v5 }
 0x736   :  { %1015 = vmatprep.subr.bf16.mxu0 %v1152_v0 }
 0x739   :  { %1016 = vmatpush3.bf16.msra.mxu0 %v1254_v7 }
 0x73a   :  { %1017 = vmatprep.subr.bf16.mxu0 %v1152_v0 }
 0x73d   :  { %1018 = vmatpush3.bf16.msra.mxu0 %v1269_v12 }
 0x73e   :  { %1019 = vmatprep.subr.bf16.mxu0 %v1152_v0 }
 0x741   :  { %1020 = vmatpush3.bf16.msra.mxu0 %v1283_v16 }
 0x742   :  { %1021 = vmatprep.subr.bf16.mxu0 %v1152_v0 }
 0x745   :  { %1022 = vmatpush3.bf16.msra.mxu0 %v1292_v19 }
 0x7fb   :  { %v579_v1 = vpop.f32.mrb[16].mxu0 }
 0x7fc   :  { %586 = vst [vmem:[#allocation9 + $0x28] sm:$0xff] %v579_v1  ;;  %v587_v2 = vpack.c.bf16 %v579_v1, %v579_v1  ;;  %v985_v3 = vpop.f32.mrb[17].mxu0 }
 0x7fd   :  { %v582_v5 = vpop.f32.mrb[18].mxu0 }
 0x7fe   :  { %v986_v22 = vpop.f32.mrb[19].mxu0  ;;  %1004 = vmatmul.mubr.bf16.vlgmr.msra.gmra.mrb[16].mxu1 %v587_v2 }
 0x8d1   :  { %v622_v7 = vpop.f32.mrb[16].mxu1 }
 0x8d2   :  { %v623_v23 = vadd.f32 %v622_v7, %v1257_v8  ;;  %v1005_v30 = vpop.f32.mrb[17].mxu1 }
 0x8d3   :  { %v625_v12 = vpop.f32.mrb[18].mxu1 }
 0x8d4   :  { %v628_v31 = vmax.f32 %v1259_v9, %v623_v23  ;;  %v1006_v32 = vpop.f32.mrb[19].mxu1 }
 0x8d6   :  { %v629_v16 = vmin.f32 %v1274_v13, %v628_v31 }
 0x8d8   :  { %v630_v0 = vsub.f32 %v623_v23, %v629_v16 }
 0x8da   :  { %v631_v33 = vpack.c.bf16 %v630_v0, %v630_v0 }
 0x8dc   :  { %1024 = vmatmul.mubr.bf16.vlgmr.msra.gmra.mrb[20].mxu0 %v631_v33 }
 0x9af   :  { %v666_v19 = vpop.f32.mrb[20].mxu0 }
 0x9b0   :  { %673 = vst [vmem:[#allocation9 + $0x30] sm:$0xff] %v666_v19  ;;  %v1025_v34 = vpop.f32.mrb[21].mxu0 }
 0x9b1   :  { %v669_v35 = vpop.f32.mrb[22].mxu0 }
 0x9b2   :  { %1130 = shalt.err (!%p1127_p0)
}
 0x9b3   :  { %s1131_s7 = scalar_lea.hbm %s1502_s4, 896 }
 0x9b4   :  { %p1132_p1 = scmp.ne.s32.totalorder %s1502_s4, %s1131_s7  ;;  %p1135_p2 = scmp.lt.u32.totalorder %s1131_s7, %s1502_s4 }
 0x9b6   :  { %p1137_p3 = pnand %p1135_p2, %p1132_p1 }
 0x9b8   :  { %1140 = shalt.err (!%p1137_p3)
}
 0x9b9   :  { %s1155_s12 = smov 128   ;;  %s1156_s13 = smov 8   ;;  %v1026_v8 = vpop.f32.mrb[23].mxu0 }
 0x9ba   :  { %685 = dma.vmem_to_hbm [thread:$0]  %s680_s29, 896, %s1502_s4, [#allocation5], %s1155_s12, %s1155_s12, %s1156_s13  }
 0x9bb   :  { %1145 = dma.done.wait [#allocation5], 896  }
 0x9bc   :  { %1146 = vsyncadd [#allocation5], 4294966400 }
 0x9bd   :  { %689 = vsyncpa [#allocation4], 1 }
 0x9be   :  { %690 = vsyncpa [#allocation7], 1 }
 0x9bf   :  { %691 = vsyncpa [#allocation5], 1 }

</bundles_post_ra>
